<compile_context>
chip_gen: v7x
topology: tpu7x:2x2x1
jax: 0.10.0
libtpu: 0.0.40
codegen_flags: <defaults>
</compile_context>

<pallas_src>
import functools

import jax
import jax.numpy as jnp
from jax import lax
from jax.experimental import pallas as pl
from jax.experimental.pallas import tpu as pltpu

# ---- static CTC config (Wav2Vec2CtcConfig) ---------------------------------
BLANK_WEIGHT = 0.5      # cfg.blank_weight (non-zero to exercise the branch)
BLANK_MODE = "add"      # cfg.blank_mode in {"add", "set"}

NEG_INF = float("-inf")

LANE = 128              # vocab padded to a multiple of the lane width
# Rows (time frames) per grid step.  512 is a good default:
#   v6e: multiple of 256 for the 2x256 MXU, plenty of VMEM headroom
#   v7x: ~1 MiB live VMEM per double-buffered bf16 feature stream at D=1024
#   v5e: the bf16 feature cast is the dominant HBM-traffic win there
TILE_T = 512


def _round_up(x, m):
    return ((x + m - 1) // m) * m


# ---------------------------------------------------------------------------
# Fused kernel: projection + blank weight + padding mask + log_softmax
# ---------------------------------------------------------------------------
def _w2v_ctc_kernel(x_ref, w_ref, b_ref, m_ref, o_ref, *,
                    v_real, blank_weight, blank_mode):
    # x_ref : (1, tT, D)  bf16   features tile (batch-major)
    # w_ref : (D, Vp)     bf16   resident projection weight (vocab padded)
    # b_ref : (1, Vp)     f32    resident bias (vocab padded)
    # m_ref : (1, tT, 1)  f32    padding mask tile (>0 means padded frame)
    # o_ref : (1, tT, Vp) f32    log-probs tile (batch-major, vocab padded)
    x = x_ref[0]                                                      # (tT, D) bf16
    logits = jnp.dot(x, w_ref[...],
                     preferred_element_type=jnp.float32)              # (tT, Vp) f32
    logits = logits + b_ref[...]                                      # bias broadcast

    col = lax.broadcasted_iota(jnp.int32, logits.shape, 1)            # vocab lane idx
    is_blank = col == 0
    valid_col = col < v_real                                          # real vocab cols

    # blank_weight handling (statically specialized, mirrors the python branch)
    if blank_weight != 0.0:
        if blank_mode == "add":
            logits = jnp.where(is_blank, logits + blank_weight, logits)
        elif blank_mode == "set":
            logits = jnp.where(is_blank, jnp.float32(blank_weight), logits)
        else:
            raise Exception(f"invalid blank mode {blank_mode}")

    # padded vocab lanes must not participate in the softmax
    logits = jnp.where(valid_col, logits, NEG_INF)

    # padding-mask overwrite: masked frames -> [0, -inf, ..., -inf]
    padded = m_ref[0] > 0.0                                           # (tT, 1)
    masked_row = jnp.where(is_blank, jnp.float32(0.0), jnp.float32(NEG_INF))
    logits = jnp.where(padded, masked_row, logits)

    # log_softmax over the vocab dim (numerically stable; -inf safe because
    # the blank column is always finite, so xmax is finite for every row)
    xmax = jnp.max(logits, axis=-1, keepdims=True)
    shifted = logits - xmax
    lse = jnp.log(jnp.sum(jnp.exp(shifted), axis=-1, keepdims=True))
    o_ref[0] = shifted - lse


# ---------------------------------------------------------------------------
# Wav2VecCtc forward + get_normalized_probs(log_probs=True)
# ---------------------------------------------------------------------------
def wav2vec_ctc_log_probs(features, padding_mask, proj_w, proj_b,
                          blank_weight=BLANK_WEIGHT, blank_mode=BLANK_MODE):
    """
    features     : (B, T, D) f32 — synthesized transformer output
    padding_mask : (B, T) bool   — True where a frame is padding
    proj_w       : (D, V) f32, proj_b: (V,) f32 — encoder's final projection
    returns      : (T, B, V) f32 log-probabilities (fairseq time-major layout)
    """
    # TODO(synk): the full w2v_encoder (conv feature extractor + transformer
    # stack) is external to this module; hidden states are taken as input.
    B, T, D = features.shape
    V = proj_w.shape[1]
    Vp = _round_up(V, LANE)

    tT = T if T <= TILE_T else TILE_T            # full dim, or an 8/128-friendly tile
    num_t = pl.cdiv(T, tT)

    # bf16 MXU inputs (halves HBM traffic of the dominant feature stream);
    # accumulation and all post-matmul math stay in f32.
    x_bf = features.astype(jnp.bfloat16)
    w_p = jnp.zeros((D, Vp), jnp.bfloat16).at[:, :V].set(proj_w.astype(jnp.bfloat16))
    b_p = jnp.zeros((1, Vp), jnp.float32).at[0, :V].set(proj_b.astype(jnp.float32))
    mask3 = padding_mask.astype(jnp.float32)[:, :, None]              # (B, T, 1)

    kernel = functools.partial(
        _w2v_ctc_kernel, v_real=V,
        blank_weight=float(blank_weight), blank_mode=blank_mode)

    out = pl.pallas_call(
        kernel,
        out_shape=jax.ShapeDtypeStruct((B, T, Vp), jnp.float32),
        grid=(B, num_t),
        in_specs=[
            # features tile, streamed & double-buffered
            pl.BlockSpec((1, tT, D), lambda b, t: (b, t, 0)),
            # projection weight / bias: resident (constant block index)
            pl.BlockSpec((D, Vp), lambda b, t: (0, 0)),
            pl.BlockSpec((1, Vp), lambda b, t: (0, 0)),
            # padding-mask tile (tiny, lane dim = 1 = full dim)
            pl.BlockSpec((1, tT, 1), lambda b, t: (b, t, 0)),
        ],
        out_specs=pl.BlockSpec((1, tT, Vp), lambda b, t: (b, t, 0)),
        compiler_params=pltpu.CompilerParams(
            dimension_semantics=("parallel", "parallel")),
    )(x_bf, w_p, b_p, mask3)

    # fairseq encoder_out is time-major (T, B, V).  The permutation + vocab
    # un-padding run in XLA on the small output (V << D), avoiding any
    # transpose of the (B, T, D) feature tensor.
    return jnp.transpose(out, (1, 0, 2))[:, :, :V]


# ---------------------------------------------------------------------------
if __name__ == "__main__":
    key = jax.random.PRNGKey(0)
    B, T, D, V = 2, 8, 32, 16

    k1, k2, k3 = jax.random.split(key, 3)
    features = jax.random.normal(k1, (B, T, D), dtype=jnp.float32)
    proj_w = (jax.random.normal(k2, (D, V), dtype=jnp.float32)
              / jnp.sqrt(jnp.float32(D)))
    proj_b = jax.random.normal(k3, (V,), dtype=jnp.float32) * 0.1

    # deterministic padding mask: last 2 frames of sample 1 are padded
    padding_mask = jnp.zeros((B, T), dtype=bool).at[1, T - 2:].set(True)

    out = wav2vec_ctc_log_probs(features, padding_mask, proj_w, proj_b)
    out = jax.block_until_ready(out)

    # pure-JAX reference (same bf16-rounded operands, so only the matmul
    # accumulation order differs from the kernel)
    f_bf = features.astype(jnp.bfloat16).astype(jnp.float32)
    w_bf = proj_w.astype(jnp.bfloat16).astype(jnp.float32)
    logits_ref = jnp.einsum("btd,dv->tbv", f_bf, w_bf) + proj_b
    logits_ref = logits_ref.at[..., 0].add(BLANK_WEIGHT)
    masked_row = jnp.full((V,), NEG_INF, dtype=jnp.float32).at[0].set(0.0)
    logits_ref = jnp.where(padding_mask.T[..., None], masked_row, logits_ref)
    ref = jax.nn.log_softmax(logits_ref, axis=-1)

    assert out.shape == (T, B, V)
    finite = jnp.isfinite(ref)
    assert bool(jnp.allclose(jnp.where(finite, out, 0.0),
                             jnp.where(finite, ref, 0.0),
                             atol=2e-3, rtol=2e-3))
    assert bool(jnp.all(jnp.isneginf(out) == jnp.isneginf(ref)))

    print("KERNEL_OK")
</pallas_src>

<mosaic_0001>
module attributes {stable_mosaic.version = 11 : i64} {
  func.func @_w2v_ctc_kernel(%arg0: i32, %arg1: i32, %arg2: memref<1x8x32xbf16, #tpu.memory_space<vmem>>, %arg3: memref<32x128xbf16, #tpu.memory_space<vmem>>, %arg4: memref<1x128xf32, #tpu.memory_space<vmem>>, %arg5: memref<1x8x1xf32, #tpu.memory_space<vmem>>, %arg6: memref<1x8x128xf32, #tpu.memory_space<vmem>>) attributes {dimension_semantics = [#tpu.dimension_semantics<parallel>, #tpu.dimension_semantics<parallel>], iteration_bounds = array<i64: 2, 1>, scalar_prefetch = 0 : i64, scratch_operands = 0 : i64, tpu.core_type = #tpu.core_type<tc>, window_params = [{transform_indices = @transform_0, window_bounds = array<i64: 1, 8, 32>}, {pipeline_mode = #tpu.pipeline_mode<synchronous>, transform_indices = @transform_1, window_bounds = array<i64: 32, 128>}, {pipeline_mode = #tpu.pipeline_mode<synchronous>, transform_indices = @transform_2, window_bounds = array<i64: 1, 128>}, {transform_indices = @transform_3, window_bounds = array<i64: 1, 8, 1>}, {transform_indices = @transform_4, window_bounds = array<i64: 1, 8, 128>}]} {
    %c0 = arith.constant 0 : index
    %c0_0 = arith.constant 0 : index
    %c0_1 = arith.constant 0 : index
    %0 = vector.load %arg2[%c0, %c0_0, %c0_1] : memref<1x8x32xbf16, #tpu.memory_space<vmem>>, vector<1x8x32xbf16>
    %1 = vector.shape_cast %0 : vector<1x8x32xbf16> to vector<8x32xbf16>
    %c0_2 = arith.constant 0 : index
    %c0_3 = arith.constant 0 : index
    %2 = vector.load %arg3[%c0_2, %c0_3] : memref<32x128xbf16, #tpu.memory_space<vmem>>, vector<32x128xbf16>
    %cst = arith.constant dense<0.000000e+00> : vector<8x128xf32>
    %3 = tpu.matmul %1, %2, %cst {dimension_numbers = #tpu.dot_dimension_numbers<[1], [0], [0], [1], [0, 0, 1, 1], [], []>} : vector<8x32xbf16>, vector<32x128xbf16>, vector<8x128xf32> -> vector<8x128xf32>
    %c0_4 = arith.constant 0 : index
    %c0_5 = arith.constant 0 : index
    %4 = vector.load %arg4[%c0_4, %c0_5] : memref<1x128xf32, #tpu.memory_space<vmem>>, vector<1x128xf32>
    %5 = vector.broadcast %4 : vector<1x128xf32> to vector<8x128xf32>
    %6 = arith.addf %3, %5 : vector<8x128xf32>
    %7 = tpu.iota {dimensions = array<i32: 1>} : vector<8x128xi32>
    %c0_i32 = arith.constant 0 : i32
    %8 = vector.broadcast %c0_i32 : i32 to vector<8x128xi32>
    %9 = arith.cmpi eq, %7, %8 : vector<8x128xi32>
    %c16_i32 = arith.constant 16 : i32
    %10 = vector.broadcast %c16_i32 : i32 to vector<8x128xi32>
    %11 = arith.cmpi slt, %7, %10 : vector<8x128xi32>
    %cst_6 = arith.constant 5.000000e-01 : f32
    %12 = vector.broadcast %cst_6 : f32 to vector<8x128xf32>
    %13 = arith.addf %6, %12 : vector<8x128xf32>
    %14 = arith.select %9, %13, %6 : vector<8x128xi1>, vector<8x128xf32>
    %cst_7 = arith.constant 0xFF800000 : f32
    %15 = vector.broadcast %cst_7 : f32 to vector<8x128xf32>
    %16 = arith.select %11, %14, %15 : vector<8x128xi1>, vector<8x128xf32>
    %c0_8 = arith.constant 0 : index
    %c0_9 = arith.constant 0 : index
    %c0_10 = arith.constant 0 : index
    %17 = vector.load %arg5[%c0_8, %c0_9, %c0_10] : memref<1x8x1xf32, #tpu.memory_space<vmem>>, vector<1x8x1xf32>
    %18 = vector.shape_cast %17 : vector<1x8x1xf32> to vector<8x1xf32>
    %cst_11 = arith.constant 0.000000e+00 : f32
    %19 = vector.broadcast %cst_11 : f32 to vector<8x1xf32>
    %20 = arith.cmpf ogt, %18, %19 : vector<8x1xf32>
    %cst_12 = arith.constant 0.000000e+00 : f32
    %cst_13 = arith.constant 0xFF800000 : f32
    %21 = vector.broadcast %cst_12 : f32 to vector<8x128xf32>
    %22 = vector.broadcast %cst_13 : f32 to vector<8x128xf32>
    %23 = arith.select %9, %21, %22 : vector<8x128xi1>, vector<8x128xf32>
    %24 = vector.shape_cast %20 : vector<8x1xi1> to vector<8x1xi1>
    %25 = vector.broadcast %24 : vector<8x1xi1> to vector<8x128xi1>
    %26 = arith.select %25, %23, %16 : vector<8x128xi1>, vector<8x128xf32>
    %cst_14 = arith.constant dense<0xFF800000> : vector<8xf32>
    %27 = vector.multi_reduction <maximumf>, %26, %cst_14 [1] : vector<8x128xf32> to vector<8xf32>
    %28 = vector.shape_cast %27 : vector<8xf32> to vector<8x1xf32>
    %29 = vector.broadcast %28 : vector<8x1xf32> to vector<8x128xf32>
    %30 = arith.subf %26, %29 : vector<8x128xf32>
    %31 = math.exp %30 : vector<8x128xf32>
    %cst_15 = arith.constant dense<0.000000e+00> : vector<8xf32>
    %32 = vector.multi_reduction <add>, %31, %cst_15 [1] : vector<8x128xf32> to vector<8xf32>
    %33 = vector.shape_cast %32 : vector<8xf32> to vector<8x1xf32>
    %34 = math.log %33 : vector<8x1xf32>
    %35 = vector.broadcast %34 : vector<8x1xf32> to vector<8x128xf32>
    %36 = arith.subf %30, %35 : vector<8x128xf32>
    %c0_16 = arith.constant 0 : index
    %c0_17 = arith.constant 0 : index
    %c0_18 = arith.constant 0 : index
    %37 = vector.load %arg6[%c0_16, %c0_17, %c0_18] : memref<1x8x128xf32, #tpu.memory_space<vmem>>, vector<1x8x128xf32>
    %38 = vector.shape_cast %37 : vector<1x8x128xf32> to vector<8x128xf32>
    %39 = vector.shape_cast %36 : vector<8x128xf32> to vector<1x8x128xf32>
    tpu.vector_store %arg6[%c0_16, %c0_17, %c0_18], %39 {strides = array<i32>} : memref<1x8x128xf32, #tpu.memory_space<vmem>>, vector<1x8x128xf32>,
    return
  }
  func.func @transform_0(%arg0: i32, %arg1: i32) -> (i32, i32, i32) {
    %c0_i32 = arith.constant 0 : i32
    %c0_i32_0 = arith.constant 0 : i32
    return %arg0, %arg1, %c0_i32 : i32, i32, i32
  }
  func.func @transform_1(%arg0: i32, %arg1: i32) -> (i32, i32) {
    %c0_i32 = arith.constant 0 : i32
    %c0_i32_0 = arith.constant 0 : i32
    %c0_i32_1 = arith.constant 0 : i32
    return %c0_i32, %c0_i32_0 : i32, i32
  }
  func.func @transform_2(%arg0: i32, %arg1: i32) -> (i32, i32) {
    %c0_i32 = arith.constant 0 : i32
    %c0_i32_0 = arith.constant 0 : i32
    %c0_i32_1 = arith.constant 0 : i32
    return %c0_i32, %c0_i32_0 : i32, i32
  }
  func.func @transform_3(%arg0: i32, %arg1: i32) -> (i32, i32, i32) {
    %c0_i32 = arith.constant 0 : i32
    %c0_i32_0 = arith.constant 0 : i32
    return %arg0, %arg1, %c0_i32 : i32, i32, i32
  }
  func.func @transform_4(%arg0: i32, %arg1: i32) -> (i32, i32, i32) {
    %c0_i32 = arith.constant 0 : i32
    %c0_i32_0 = arith.constant 0 : i32
    return %arg0, %arg1, %c0_i32 : i32, i32, i32
  }
}

</mosaic_0001>

<bundles_post_ra>
// kernel: tpu_custom_call.1
= control target key start
LH: loop header
LB: loop body
LE: loop exit
PB: predicated region body
PF: predicated region fallthrough
CT: control target
= control target key end

     0   :  { %9 = vsyncpa [#allocation3], 0  ;;  %s898_s0 = inlined_call_operand.hbm [shape: bf16[2,8,32], index: 0, kind: input, shape index: {}]   ;;  %s899_s1 = inlined_call_operand.vmem [shape: bf16[32,128], index: 1, kind: input, shape index: {}]   ;;  %s900_s2 = inlined_call_operand.vmem [shape: f32[1,128], index: 2, kind: input, shape index: {}]   ;;  %s901_s3 = inlined_call_operand.vmem [shape: f32[2,8,1], index: 3, kind: input, shape index: {}]   ;;  %s902_s4 = inlined_call_operand.hbm [shape: f32[2,8,128], index: 4, kind: output, shape index: {}]  }
   0x1   :  { %11 = vsyncpa [#allocation3 + $0x1], 0 }
   0x2   :  { %12 = vsyncpa [#allocation4], 0 }
   0x3   :  { %14 = vsyncpa [#allocation4 + $0x1], 0  ;;  %s711_s15 = smov 0   ;;  %s713_s16 = smov 0  }
   0x4   :  { %s715_s17 = smov 0   ;;  %s717_s18 = smov 0  }
   0x5   :  { %s719_s19 = smov 0   ;;  %s721_s20 = smov 0  }
   0x6 LB: > { %s464_s21 = sadd.s32 4294967295, %s678_s20   ;;  %s465_s22 = sadd.s32 4294967294, %s678_s20   ;;  %s678_s20 = sphi %s721_s20, %s20_s20   ;;  %s674_s19 = sphi %s719_s19, %s918_s19   ;;  %s670_s18 = sphi %s717_s18, %s917_s18   ;;  %s666_s17 = sphi %s715_s17, %s916_s17   ;;  %s662_s16 = sphi %s713_s16, %s915_s16   ;;  %s658_s15 = sphi %s711_s15, %s914_s15  }
   0x7   : > { %s32_s23 = sadd.s32 1, %s674_s19  ;;  %s41_s24 = sadd.s32 1, %s666_s17 }
   0x8   : > { %p34_p0 = scmp.ge.s32.totalorder %s32_s23, 2  ;;  %p48_p1 = scmp.ne.s32.totalorder %s666_s17, %s662_s16 }
   0x9   : > { %p49_p2 = scmp.eq.s32.totalorder %s678_s20, 0  ;;  %p54_p3 = scmp.ne.s32.totalorder %s662_s16, %s658_s15 }
   0xa   : > { %s920_s23 = smov (%p34_p0, %s32_s23), 0  ;;  %p55_p5 = scmp.eq.s32.totalorder %s464_s21, 0 }
   0xb   : > { %p752_p4 = por %p49_p2, %p48_p1  ;;  %s36_s26 = ssub.s32 %s674_s19, %s920_s23 }
   0xc   : > { %p150_p6 = scmp.eq.s32.totalorder %s464_s21, 1  ;;  %p39_p7 = scmp.eq.s32.totalorder %s36_s26, 0 }
   0xd   : > { %p758_p8 = por %p55_p5, %p54_p3  ;;  %p156_p10 = scmp.eq.s32.totalorder %s465_s22, 1 }
   0xe   : > { %p762_p9 = por %p150_p6, %p48_p1  ;;  %p505_p13 = scmp.lt.s32.totalorder %s678_s20, 2 }
   0xf   : > { %s767_s29 = scalar_select %p39_p7, %s666_s17, %s41_s24  }
  0x10   : > { %s906_s28 = scalar_select %p762_p9, 1, 0 }
  0x11   : > { %p769_p11 = por %p156_p10, %p54_p3  ;;  %s182_s5 = sand.u32 1, %s666_s17  }
  0x12   : > { %s468_s6 = sshll.u32 %s182_s5, 2  ;;  %s469_s7 = sshll.u32 %s674_s19, 6 }
  0x13   : > { %s907_s30 = scalar_select %p769_p11, 1, 0 }
  0x14   : > { %s780_s10 = scalar_lea.hbm %s898_s0, %s469_s7  ;;  %s186_s11 = scalar_lea.vmem [#allocation2], %s468_s6 }
  0x15   : > { %s194_s12 = sshll.u32 %s186_s11, 4  ;;  %p786_p0 = pnand %p505_p13, %p752_p4  ;;  %s782_s12 = int_to_ptr.vmem [resolvable:$true] %s194_s12 }
  0x16   : > { %s183_s14 = scalar_lea.sflag [#allocation3], %s182_s5  ;;  %s566_s21 = scalar_lea.hbm %s780_s10, 64 }
  0x17   : > { %p567_p3 = scmp.ne.s32.totalorder %s780_s10, %s566_s21  ;;  %p568_p5 = pneg %p786_p0 }
  0x18   : > { %s571_s25 = scalar_lea.hbm %s898_s0, 128  ;;  %p572_p4 = scmp.lt.u32.totalorder %s780_s10, %s898_s0 }
  0x19   : > { %p569_p6 = pnand %p568_p5, %p567_p3  ;;  %p573_p10 = scmp.lt.u32.totalorder %s571_s25, %s566_s21 }
  0x1a   : > { %p575_p12 = scmp.lt.u32.totalorder %s566_s21, %s780_s10 }
  0x1b   : > { %p570_p7 = pneg %p569_p6  ;;  %p574_p13 = por %p573_p10, %p572_p4 }
  0x1d   : > { %p576_p1 = por %p575_p12, %p574_p13 }
  0x1f   : > { %p577_p2 = pnand %p576_p1, %p570_p7 }
  0x21   : > { %580 = shalt.err (!%p577_p2)
}
  0x22   : > { %s581_s5 = scalar_lea.vmem %s782_s12, 64  ;;  %s680_s7 = smov [#allocation2]  }
  0x23   : > { %p582_p3 = scmp.ne.s32.totalorder %s782_s12, %s581_s5  ;;  %s586_s8 = sshll.u32 %s680_s7, 4  ;;  %s587_s8 = int_to_ptr.vmem [resolvable:$false] %s586_s8 }
  0x24   : > { %s588_s9 = scalar_lea.vmem %s587_s8, 128  ;;  %p589_p9 = scmp.lt.s32.totalorder %s782_s12, %s587_s8 }
  0x25   : > { %p584_p6 = pnand %p582_p3, %p568_p5  ;;  %p590_p4 = scmp.lt.s32.totalorder %s588_s9, %s581_s5 }
  0x27   : > { %p585_p11 = pneg %p584_p6  ;;  %p591_p10 = por %p590_p4, %p589_p9 }
  0x29   : > { %p592_p12 = pnand %p591_p10, %p585_p11 }
  0x2b   : > { %595 = shalt.err (!%p592_p12)
}
  0x2c   : > { %500 = dma.hbm_to_vmem [thread:$0]  (!%p786_p0), %s780_s10, 64, %s782_s12, %s183_s14  }
  0x2d   : > { %p909_p1 = scmp.lt.s32.totalorder %s678_s20, 3  ;;  %p910_p2 = scmp.ge.s32.totalorder %s678_s20, 1 }
  0x2f   : > { %p210_p5 = pnand %p910_p2, %p909_p1 }
  0x30   : > { %s822_s11 = sand.u32 (!%p210_p5), 1, %s662_s16  }
  0x31   : > { %213 = sbr.rel (%p210_p5) target bundleno = 613 (0x265), region = 36  ;;  %s471_s21 = sshll.u32 (!%p210_p5), %s822_s11, 2 }
  0x32   : > { %s216_s22 = scalar_lea.sflag (!%p210_p5), [#allocation3], %s822_s11  ;;  %s219_s24 = scalar_lea.vmem (!%p210_p5), [#allocation2], %s471_s21 }
  0x38   : > { %649 = dma.done.wait (%p758_p8), %s216_s22, 64  }
  0x39   : > { %651 = vsyncadd (%p758_p8), %s216_s22, 4294967232  ;;  %p251_p9 = scmp.lt.s32.totalorder %s670_s18, 1  ;;  %v681_v0 = vmov 0.0   ;;  %vm682_vm0 = vmmov 0   ;;  %v683_v1 = vmov 0   ;;  %v560_v2 = vld [vmem:[%s899_s1] sm:$0xff]   ;;  %v327_v7 = vlaneseq }
  0x3a   : > { %485 = vmatprep.subr.bf16.mxu0 %v681_v0  ;;  %489 = vmatprep.mubr.msk.bf16.mxu0 %vm682_vm0, %v681_v0  ;;  %v561_v3 = vld [vmem:[%s899_s1 + $0x8] sm:$0xff]   ;;  %v259_v6 = vld [vmem:[%s219_s24] sm:$0xf]  ;;  %vm283_vm2 = vcmask 261120   ;;  %v684_v17 = vmov -inf   ;;  %s472_s9 = sshll.u32 %s822_s11, 3 }
  0x3b   : > { %559 = vset.pattern.permute.xlu0 %v683_v1  ;;  %s252_s10 = scalar_select %p251_p9, %s670_s18, 1  ;;  %486 = vmatpush3.bf16.msra.mxu0 %v560_v2  ;;  %v328_v8 = vand.u32 127, %v327_v7  ;;  %v474_v9 = vld [vmem:[%s900_s2] ss:$0 sm:$0xff] }
  0x3c   : > { %487 = vmatprep.subr.bf16.mxu0 %v681_v0  ;;  %s479_s21 = sshll.u32 %s670_s18, 7  ;;  %s250_s22 = scalar_lea.vmem [#allocation5], %s472_s9 }
  0x3d   : > { %s473_s12 = sshll.u32 %s252_s10, 3  ;;  %vm329_vm3 = vcmp.eq.s32.totalorder %v328_v8, 0  ;;  %vm330_vm4 = vcmp.lt.s32.totalorder %v328_v8, 16  ;;  %s369_s24 = sshll.u32 %s250_s22, 4  ;;  %s851_s24 = int_to_ptr.vmem [resolvable:$true] %s369_s24 }
  0x3e   : > { %s257_s25 = scalar_lea.vmem %s901_s3, %s473_s12  ;;  %v336_v18 = vsel %vm329_vm3, 0.0, %v684_v17  ;;  %s849_s13 = scalar_lea.hbm %s902_s4, %s479_s21 }
  0x3f   : > { %v334_v4 = vld [vmem:[%s257_s25] sm:$0xff]  ;;  %488 = vmatpush3.bf16.msra.mxu0 %v561_v3  ;;  %s355_s14 = scalar_lea.sflag [#allocation4], %s822_s11  ;;  %s596_s25 = scalar_lea.vmem %s851_s24, 128 }
  0x40   : > { %vm335_vm1 = vcmp.gt.f32.partialorder %v334_v4, 0.0  ;;  %p597_p8 = scmp.ne.s32.totalorder %s851_s24, %s596_s25  ;;  %p911_p11 = scmp.ne.s32.totalorder %s906_s28, 0 }
  0x41   : > { %v337_v5 = vsel %vm335_vm1, 1, %v683_v1  ;;  %s685_s18 = smov [#allocation5]  }
  0x42   : > { %339 = vperm.xlu0 %559, %v337_v5   ;;  %490 = vmatmul.mubr.msk.bf16.vlgmr.msra.gmra.mrb[0].mxu0 %vm283_vm2, %v259_v6  ;;  %p598_p0 = pnand %p597_p8, %p911_p11  ;;  %s600_s26 = sshll.u32 %s685_s18, 4  ;;  %s601_s26 = int_to_ptr.vmem [resolvable:$false] %s600_s26 }
  0x43   : > { %s602_s6 = scalar_lea.vmem %s601_s26, 256  ;;  %p603_p13 = scmp.lt.s32.totalorder %s851_s24, %s601_s26 }
  0x44   : > { %p599_p7 = pneg %p598_p0  ;;  %p604_p3 = scmp.lt.s32.totalorder %s602_s6, %s596_s25 }
  0x46   : > { %p605_p6 = por %p604_p3, %p603_p13 }
  0x48   : > { %p606_p4 = pnand %p605_p6, %p599_p7 }
  0xc1   : > { %v340_v13 = vpop.permute.xlu0 %339 }
  0xc2   : > { %vm341_vm5 = vcmp.eq.s32.totalorder %v340_v13, 1 }
 0x115   : > { %v321_v10 = vpop.f32.mrb[0].mxu0 }
 0x116   : > { %v322_v11 = vadd.f32 %v474_v9, %v321_v10  ;;  %v491_v12 = vpop.f32.mrb[1].mxu0 }
 0x117   : > { %v324_v14 = vpop.f32.mrb[2].mxu0 }
 0x118   : > { %v331_v15 = vadd.f32 0.5, %v322_v11  ;;  %v492_v16 = vpop.f32.mrb[3].mxu0 }
 0x11a   : > { %v332_v19 = vsel %vm329_vm3, %v331_v15, %v322_v11 }
 0x11b   : > { %v333_v20 = vsel %vm330_vm4, %v332_v19, -inf }
 0x11c   : > { %v342_v21 = vsel %vm341_vm5, %v336_v18, %v333_v20 }
 0x11d   : > { %343 = vmax.xlane.f32.xlu0 %v342_v21 }
 0x1aa   : > { %v344_v22 = vpop.xlane.xlu0 %343 }
 0x1ab   : > { %v345_v23 = vsub.f32 %v342_v21, %v344_v22 }
 0x1ad   : > { %v346_v24 = vmul.f32 1.442695, %v345_v23 }
 0x1af   : > { %562 = vpow2.f32 %v346_v24 }
 0x1b9   : > { %v563_v25 = vpop.eup %562 }
 0x1ba   : > { %348 = vadd.xlane.f32.xlu1 %v563_v25 }
 0x247   : > { %v349_v26 = vpop.xlane.xlu1 %348 }
 0x248   : > { %564 = vlog2.f32 %v349_v26 }
 0x252   : > { %v565_v27 = vpop.eup %564 }
 0x253   : > { %v351_v28 = vmul.f32 0.6931472, %v565_v27 }
 0x255   : > { %v352_v29 = vsub.f32 %v345_v23, %v351_v28 }
 0x257   : > { %353 = vst [vmem:[%s250_s22] sm:$0xff] %v352_v29 }
 0x258   : > { %609 = shalt.err (!%p606_p4)
}
 0x259   : > { %s610_s11 = scalar_lea.hbm %s849_s13, 128  ;;  %s614_s7 = scalar_lea.hbm %s902_s4, 256 }
 0x25a   : > { %p611_p10 = scmp.ne.s32.totalorder %s849_s13, %s610_s11  ;;  %p615_p2 = scmp.lt.u32.totalorder %s849_s13, %s902_s4 }
 0x25b   : > { %p616_p5 = scmp.lt.u32.totalorder %s614_s7, %s610_s11  ;;  %p618_p8 = scmp.lt.u32.totalorder %s610_s11, %s849_s13 }
 0x25c   : > { %p612_p12 = pnand %p611_p10, %p911_p11 }
 0x25d   : > { %p617_p9 = por %p616_p5, %p615_p2 }
 0x25e   : > { %p613_p1 = pneg %p612_p12 }
 0x25f   : > { %p619_p0 = por %p618_p8, %p617_p9 }
 0x261   : > { %p620_p7 = pnand %p619_p0, %p613_p1 }
 0x263   : > { %623 = shalt.err (!%p620_p7)
}
 0x264   : > { %495 = dma.vmem_to_hbm [thread:$0]  (%p911_p11), %s851_s24, 128, %s849_s13, %s355_s14  }
 0x265 PF: > { %s381_s21 = sand.u32 1, %s658_s15   ;;  %p912_p13 = scmp.ne.s32.totalorder %s907_s30, 0 }
 0x266   : > { %p913_p3 = scmp.ge.s32.totalorder %s678_s20, 2  ;;  %s382_s22 = scalar_lea.sflag [#allocation4], %s381_s21 }
 0x268   : > { %p502_p6 = pnand %p913_p3, %p912_p13 }
 0x26a   : > { %653 = dma.done.wait (!%p502_p6), %s382_s22, 128  }
 0x26b   : > { %655 = vsyncadd (!%p502_p6), %s382_s22, 4294967168  ;;  %s20_s20 = sadd.s32 1, %s678_s20   ;;  %s914_s15 = smov %s662_s16 }
 0x26c   : > { %p17_p4 = scmp.ge.s32.totalorder %s20_s20, 4   ;;  %s915_s16 = smov %s666_s17 }
 0x26d   : > { %s916_s17 = smov %s767_s29  ;;  %s917_s18 = smov %s674_s19 }
 0x26e   : > { %s918_s19 = smov %s920_s23  ;;  %19 = sbr.rel (!%p17_p4) target bundleno = 6 (0x6), region = 84 }
 0x275   :  { %387 = vsyncpa [#allocation3], 1 }
 0x276   :  { %389 = vsyncpa [#allocation3 + $0x1], 1 }
 0x277   :  { %390 = vsyncpa [#allocation4], 1 }
 0x278   :  { %392 = vsyncpa [#allocation4 + $0x1], 1 }

</bundles_post_ra>
